<compile_context>
chip_gen: v5e
topology: v5e:2x2
jax: 0.10.0
libtpu: 0.0.40
codegen_flags: <defaults>
</compile_context>

<pallas_src>
import functools

import jax
import jax.numpy as jnp
from jax.experimental import pallas as pl
from jax.experimental.pallas import tpu as pltpu

_LANE = 128
_SUBLANE = 8


def _round_up(n, m):
    return ((n + m - 1) // m) * m


def _mlp_kernel(x_ref,
                w1_ref, b1_ref,
                w2_ref, b2_ref,
                w3_ref, b3_ref,
                w4_ref, b4_ref,
                o_ref):
    """One batch tile: fused 4-layer MLP.

    bf16 MXU inputs + f32 accumulation; bias-add / ReLU in f32 (safe on v5e's
    f32-only VPU), post-ReLU activations stored as bf16 to shrink VMEM spills.
    Dropout layers are identity (eval semantics).
    """
    h = x_ref[...].astype(jnp.bfloat16)                       # (TB, in)

    # Layer 1: Linear(in, 512) + ReLU   (Dropout = identity)
    h = jnp.dot(h, w1_ref[...], preferred_element_type=jnp.float32)
    h = jnp.maximum(h + b1_ref[...], 0.0).astype(jnp.bfloat16)

    # Layer 2: Linear(512, 256) + ReLU
    h = jnp.dot(h, w2_ref[...], preferred_element_type=jnp.float32)
    h = jnp.maximum(h + b2_ref[...], 0.0).astype(jnp.bfloat16)

    # Layer 3: Linear(256, 128) + ReLU
    h = jnp.dot(h, w3_ref[...], preferred_element_type=jnp.float32)
    h = jnp.maximum(h + b3_ref[...], 0.0).astype(jnp.bfloat16)

    # Layer 4: Linear(128, out_pad); cols >= out_size are zero (padded W4/b4).
    h = jnp.dot(h, w4_ref[...], preferred_element_type=jnp.float32)
    o_ref[...] = (h + b4_ref[...]).astype(o_ref.dtype)        # lane-dense bf16 store


def prepare_params(params):
    """One-time prep: cast weights to bf16 (MXU path, half the HBM bytes) and
    zero-pad the final layer to a lane-dense multiple-of-128 output width."""
    out_size = params["w4"].shape[1]
    out_pad = _round_up(out_size, _LANE)
    prepped = {
        "w1": params["w1"].astype(jnp.bfloat16), "b1": params["b1"],
        "w2": params["w2"].astype(jnp.bfloat16), "b2": params["b2"],
        "w3": params["w3"].astype(jnp.bfloat16), "b3": params["b3"],
        "w4": jnp.pad(params["w4"],
                      ((0, 0), (0, out_pad - out_size))).astype(jnp.bfloat16),
        "b4": jnp.pad(params["b4"], ((0, 0), (0, out_pad - out_size))),
    }
    return prepped, out_size


def _choose_tile(B, block_b):
    """Pick the batch tile.

    Goals: (a) as large as possible (fills the MXU M dim, amortizes the
    ~0.35 us/step grid overhead), (b) >= 2 grid tiles whenever B allows so
    v7x's second TensorCore gets work, (c) padding waste bounded to <= ~25%
    so awkward batch sizes don't pay full cost on dead rows.
    """
    tb = min(block_b, _round_up(B, _SUBLANE))
    if B >= 2 * _SUBLANE:                       # enough rows to split across 2 TCs
        tb = min(tb, _round_up((B + 1) // 2, _SUBLANE))
    tb = max(_round_up(tb, _SUBLANE), _SUBLANE)
    while tb > _SUBLANE:
        b_pad = _round_up(B, tb)
        if 4 * (b_pad - B) <= B:                # waste <= 25%
            break
        tb = max(_round_up(tb // 2, _SUBLANE), _SUBLANE)
    b_pad = _round_up(B, tb)
    return tb, b_pad


@functools.partial(jax.jit, static_argnames=("out_size", "block_b"))
def policy_network_forward(x, prepped, *, out_size, block_b=512):
    """x: [B, input_size] float32. prepped: output of prepare_params.

    Returns [B, out_size] float32 (module semantics). The kernel itself writes
    a padded lane-dense bf16 buffer; the final slice/cast fuses under jit.
    """
    B, in_size = x.shape
    out_pad = prepped["w4"].shape[1]

    tb, b_pad = _choose_tile(B, block_b)
    if b_pad != B:
        x = jnp.pad(x, ((0, b_pad - B), (0, 0)))

    vmem = pltpu.MemorySpace.VMEM

    def resident(shape):
        # Full-array block, constant block index across the batch grid axis
        # -> loaded into VMEM once and kept resident (no re-DMA per tile).
        return pl.BlockSpec(shape, lambda i: (0, 0), memory_space=vmem)

    out = pl.pallas_call(
        _mlp_kernel,
        # bf16 output halves the dominant padded-output HBM writeback while
        # keeping the 128-wide store lane-dense (unmasked vst).
        out_shape=jax.ShapeDtypeStruct((b_pad, out_pad), jnp.bfloat16),
        grid_spec=pltpu.PrefetchScalarGridSpec(
            num_scalar_prefetch=0,
            grid=(b_pad // tb,),
            in_specs=[
                pl.BlockSpec((tb, in_size), lambda i: (i, 0), memory_space=vmem),
                resident(prepped["w1"].shape), resident(prepped["b1"].shape),
                resident(prepped["w2"].shape), resident(prepped["b2"].shape),
                resident(prepped["w3"].shape), resident(prepped["b3"].shape),
                resident(prepped["w4"].shape), resident(prepped["b4"].shape),
            ],
            out_specs=pl.BlockSpec((tb, out_pad), lambda i: (i, 0),
                                   memory_space=vmem),
        ),
        compiler_params=pltpu.CompilerParams(
            # Independent batch tiles: megacore-shard on v7x (>=2 tiles
            # guaranteed by _choose_tile when B allows); no-op on v5e/v6e.
            dimension_semantics=("parallel",),
        ),
    )(x,
      prepped["w1"], prepped["b1"],
      prepped["w2"], prepped["b2"],
      prepped["w3"], prepped["b3"],
      prepped["w4"], prepped["b4"])

    # Slice away batch/lane padding and restore f32; reads only the bf16
    # buffer and fuses into the downstream consumer under jit.
    return out[:B, :out_size].astype(jnp.float32)


def init_params(key, input_size, output_size):
    """Deterministic init matching nn.Linear shapes. PyTorch stores weight as
    [out, in]; we store the transpose [in, out] so the kernel computes x @ W
    with no in-kernel transpose. Biases are 2D [1, out] for lane broadcasting."""
    dims = [input_size, 512, 256, 128, output_size]
    params = {}
    for i in range(4):
        key, kw, kb = jax.random.split(key, 3)
        fan_in, fan_out = dims[i], dims[i + 1]
        bound = 1.0 / (fan_in ** 0.5)
        params[f"w{i+1}"] = jax.random.uniform(
            kw, (fan_in, fan_out), jnp.float32, -bound, bound)
        params[f"b{i+1}"] = jax.random.uniform(
            kb, (1, fan_out), jnp.float32, -bound, bound)
    return params


def reference_forward_f32(x, params):
    """Pure-f32 JAX reference (matches the PyTorch module in eval mode)."""
    h = jnp.maximum(x @ params["w1"] + params["b1"], 0.0)
    h = jnp.maximum(h @ params["w2"] + params["b2"], 0.0)
    h = jnp.maximum(h @ params["w3"] + params["b3"], 0.0)
    return h @ params["w4"] + params["b4"]


def reference_forward_bf16(x, prepped):
    """Pure-JAX reference following the exact bf16-input / f32-accum / bf16-out
    path the kernel uses."""
    h = x
    for i in (1, 2, 3):
        h = jnp.dot(h.astype(jnp.bfloat16), prepped[f"w{i}"],
                    preferred_element_type=jnp.float32) + prepped[f"b{i}"]
        h = jnp.maximum(h, 0.0)
    h = jnp.dot(h.astype(jnp.bfloat16), prepped["w4"],
                preferred_element_type=jnp.float32) + prepped["b4"]
    return h.astype(jnp.bfloat16).astype(jnp.float32)


if __name__ == "__main__":
    key = jax.random.PRNGKey(0)
    input_size, output_size = 32, 16

    key, kx = jax.random.split(key)
    params = init_params(key, input_size, output_size)
    prepped, out_size = prepare_params(params)

    # Small batch (latency path, single tile), a ragged batch (2-tile grid with
    # bounded padding waste: 2 x 152), and a large batch (2 x 512 tiles).
    for batch in (8, 300, 1024):
        kx, kb = jax.random.split(kx)
        x = jax.random.normal(kb, (batch, input_size), jnp.float32)

        out = policy_network_forward(x, prepped, out_size=out_size)
        out = jax.block_until_ready(out)
        assert out.shape == (batch, output_size)
        assert out.dtype == jnp.float32

        ref_exact = reference_forward_bf16(x, prepped)[:, :output_size]
        assert jnp.allclose(out, ref_exact, atol=2e-2, rtol=2e-2), \
            f"B={batch}: mismatch vs bf16-path reference"

        ref_f32 = reference_forward_f32(x, params)
        assert jnp.allclose(out, ref_f32, atol=5e-2, rtol=5e-2), \
            f"B={batch}: mismatch vs f32 reference"

    print("KERNEL_OK")
</pallas_src>

<mosaic_0001>
module attributes {stable_mosaic.version = 11 : i64} {
  func.func @_mlp_kernel(%arg0: i32, %arg1: memref<8x32xf32, #tpu.memory_space<vmem>>, %arg2: memref<32x512xbf16, #tpu.memory_space<vmem>>, %arg3: memref<1x512xf32, #tpu.memory_space<vmem>>, %arg4: memref<512x256xbf16, #tpu.memory_space<vmem>>, %arg5: memref<1x256xf32, #tpu.memory_space<vmem>>, %arg6: memref<256x128xbf16, #tpu.memory_space<vmem>>, %arg7: memref<1x128xf32, #tpu.memory_space<vmem>>, %arg8: memref<128x128xbf16, #tpu.memory_space<vmem>>, %arg9: memref<1x128xf32, #tpu.memory_space<vmem>>, %arg10: memref<8x128xbf16, #tpu.memory_space<vmem>>) attributes {dimension_semantics = [#tpu.dimension_semantics<parallel>], iteration_bounds = array<i64: 1>, scalar_prefetch = 0 : i64, scratch_operands = 0 : i64, tpu.core_type = #tpu.core_type<tc>, window_params = [{transform_indices = @transform_0, window_bounds = array<i64: 8, 32>}, {pipeline_mode = #tpu.pipeline_mode<synchronous>, transform_indices = @transform_1, window_bounds = array<i64: 32, 512>}, {pipeline_mode = #tpu.pipeline_mode<synchronous>, transform_indices = @transform_2, window_bounds = array<i64: 1, 512>}, {pipeline_mode = #tpu.pipeline_mode<synchronous>, transform_indices = @transform_3, window_bounds = array<i64: 512, 256>}, {pipeline_mode = #tpu.pipeline_mode<synchronous>, transform_indices = @transform_4, window_bounds = array<i64: 1, 256>}, {pipeline_mode = #tpu.pipeline_mode<synchronous>, transform_indices = @transform_5, window_bounds = array<i64: 256, 128>}, {pipeline_mode = #tpu.pipeline_mode<synchronous>, transform_indices = @transform_6, window_bounds = array<i64: 1, 128>}, {pipeline_mode = #tpu.pipeline_mode<synchronous>, transform_indices = @transform_7, window_bounds = array<i64: 128, 128>}, {pipeline_mode = #tpu.pipeline_mode<synchronous>, transform_indices = @transform_8, window_bounds = array<i64: 1, 128>}, {transform_indices = @transform_9, window_bounds = array<i64: 8, 128>}]} {
    %c0 = arith.constant 0 : index
    %c0_0 = arith.constant 0 : index
    %0 = vector.load %arg1[%c0, %c0_0] : memref<8x32xf32, #tpu.memory_space<vmem>>, vector<8x32xf32>
    %1 = arith.truncf %0 : vector<8x32xf32> to vector<8x32xbf16>
    %c0_1 = arith.constant 0 : index
    %c0_2 = arith.constant 0 : index
    %2 = vector.load %arg2[%c0_1, %c0_2] : memref<32x512xbf16, #tpu.memory_space<vmem>>, vector<32x512xbf16>
    %cst = arith.constant dense<0.000000e+00> : vector<8x512xf32>
    %3 = tpu.matmul %1, %2, %cst {dimension_numbers = #tpu.dot_dimension_numbers<[1], [0], [0], [1], [0, 0, 1, 1], [], []>} : vector<8x32xbf16>, vector<32x512xbf16>, vector<8x512xf32> -> vector<8x512xf32>
    %c0_3 = arith.constant 0 : index
    %c0_4 = arith.constant 0 : index
    %4 = vector.load %arg3[%c0_3, %c0_4] : memref<1x512xf32, #tpu.memory_space<vmem>>, vector<1x512xf32>
    %5 = vector.broadcast %4 : vector<1x512xf32> to vector<8x512xf32>
    %6 = arith.addf %3, %5 : vector<8x512xf32>
    %cst_5 = arith.constant 0.000000e+00 : f32
    %7 = vector.broadcast %cst_5 : f32 to vector<8x512xf32>
    %8 = arith.maximumf %6, %7 : vector<8x512xf32>
    %9 = arith.truncf %8 : vector<8x512xf32> to vector<8x512xbf16>
    %c0_6 = arith.constant 0 : index
    %c0_7 = arith.constant 0 : index
    %10 = vector.load %arg4[%c0_6, %c0_7] : memref<512x256xbf16, #tpu.memory_space<vmem>>, vector<512x256xbf16>
    %cst_8 = arith.constant dense<0.000000e+00> : vector<8x256xf32>
    %11 = tpu.matmul %9, %10, %cst_8 {dimension_numbers = #tpu.dot_dimension_numbers<[1], [0], [0], [1], [0, 0, 1, 1], [], []>} : vector<8x512xbf16>, vector<512x256xbf16>, vector<8x256xf32> -> vector<8x256xf32>
    %c0_9 = arith.constant 0 : index
    %c0_10 = arith.constant 0 : index
    %12 = vector.load %arg5[%c0_9, %c0_10] : memref<1x256xf32, #tpu.memory_space<vmem>>, vector<1x256xf32>
    %13 = vector.broadcast %12 : vector<1x256xf32> to vector<8x256xf32>
    %14 = arith.addf %11, %13 : vector<8x256xf32>
    %cst_11 = arith.constant 0.000000e+00 : f32
    %15 = vector.broadcast %cst_11 : f32 to vector<8x256xf32>
    %16 = arith.maximumf %14, %15 : vector<8x256xf32>
    %17 = arith.truncf %16 : vector<8x256xf32> to vector<8x256xbf16>
    %c0_12 = arith.constant 0 : index
    %c0_13 = arith.constant 0 : index
    %18 = vector.load %arg6[%c0_12, %c0_13] : memref<256x128xbf16, #tpu.memory_space<vmem>>, vector<256x128xbf16>
    %cst_14 = arith.constant dense<0.000000e+00> : vector<8x128xf32>
    %19 = tpu.matmul %17, %18, %cst_14 {dimension_numbers = #tpu.dot_dimension_numbers<[1], [0], [0], [1], [0, 0, 1, 1], [], []>} : vector<8x256xbf16>, vector<256x128xbf16>, vector<8x128xf32> -> vector<8x128xf32>
    %c0_15 = arith.constant 0 : index
    %c0_16 = arith.constant 0 : index
    %20 = vector.load %arg7[%c0_15, %c0_16] : memref<1x128xf32, #tpu.memory_space<vmem>>, vector<1x128xf32>
    %21 = vector.broadcast %20 : vector<1x128xf32> to vector<8x128xf32>
    %22 = arith.addf %19, %21 : vector<8x128xf32>
    %cst_17 = arith.constant 0.000000e+00 : f32
    %23 = vector.broadcast %cst_17 : f32 to vector<8x128xf32>
    %24 = arith.maximumf %22, %23 : vector<8x128xf32>
    %25 = arith.truncf %24 : vector<8x128xf32> to vector<8x128xbf16>
    %c0_18 = arith.constant 0 : index
    %c0_19 = arith.constant 0 : index
    %26 = vector.load %arg8[%c0_18, %c0_19] : memref<128x128xbf16, #tpu.memory_space<vmem>>, vector<128x128xbf16>
    %cst_20 = arith.constant dense<0.000000e+00> : vector<8x128xf32>
    %27 = tpu.matmul %25, %26, %cst_20 {dimension_numbers = #tpu.dot_dimension_numbers<[1], [0], [0], [1], [0, 0, 1, 1], [], []>} : vector<8x128xbf16>, vector<128x128xbf16>, vector<8x128xf32> -> vector<8x128xf32>
    %c0_21 = arith.constant 0 : index
    %c0_22 = arith.constant 0 : index
    %28 = vector.load %arg9[%c0_21, %c0_22] : memref<1x128xf32, #tpu.memory_space<vmem>>, vector<1x128xf32>
    %29 = vector.broadcast %28 : vector<1x128xf32> to vector<8x128xf32>
    %30 = arith.addf %27, %29 : vector<8x128xf32>
    %31 = arith.truncf %30 : vector<8x128xf32> to vector<8x128xbf16>
    %c0_23 = arith.constant 0 : index
    %c0_24 = arith.constant 0 : index
    %32 = vector.load %arg10[%c0_23, %c0_24] : memref<8x128xbf16, #tpu.memory_space<vmem>>, vector<8x128xbf16>
    tpu.vector_store %arg10[%c0_23, %c0_24], %31 {strides = array<i32>} : memref<8x128xbf16, #tpu.memory_space<vmem>>, vector<8x128xbf16>,
    return
  }
  func.func @transform_0(%arg0: i32) -> (i32, i32) {
    %c0_i32 = arith.constant 0 : i32
    %c0_i32_0 = arith.constant 0 : i32
    return %arg0, %c0_i32 : i32, i32
  }
  func.func @transform_1(%arg0: i32) -> (i32, i32) {
    %c0_i32 = arith.constant 0 : i32
    %c0_i32_0 = arith.constant 0 : i32
    %c0_i32_1 = arith.constant 0 : i32
    return %c0_i32, %c0_i32_0 : i32, i32
  }
  func.func @transform_2(%arg0: i32) -> (i32, i32) {
    %c0_i32 = arith.constant 0 : i32
    %c0_i32_0 = arith.constant 0 : i32
    %c0_i32_1 = arith.constant 0 : i32
    return %c0_i32, %c0_i32_0 : i32, i32
  }
  func.func @transform_3(%arg0: i32) -> (i32, i32) {
    %c0_i32 = arith.constant 0 : i32
    %c0_i32_0 = arith.constant 0 : i32
    %c0_i32_1 = arith.constant 0 : i32
    return %c0_i32, %c0_i32_0 : i32, i32
  }
  func.func @transform_4(%arg0: i32) -> (i32, i32) {
    %c0_i32 = arith.constant 0 : i32
    %c0_i32_0 = arith.constant 0 : i32
    %c0_i32_1 = arith.constant 0 : i32
    return %c0_i32, %c0_i32_0 : i32, i32
  }
  func.func @transform_5(%arg0: i32) -> (i32, i32) {
    %c0_i32 = arith.constant 0 : i32
    %c0_i32_0 = arith.constant 0 : i32
    %c0_i32_1 = arith.constant 0 : i32
    return %c0_i32, %c0_i32_0 : i32, i32
  }
  func.func @transform_6(%arg0: i32) -> (i32, i32) {
    %c0_i32 = arith.constant 0 : i32
    %c0_i32_0 = arith.constant 0 : i32
    %c0_i32_1 = arith.constant 0 : i32
    return %c0_i32, %c0_i32_0 : i32, i32
  }
  func.func @transform_7(%arg0: i32) -> (i32, i32) {
    %c0_i32 = arith.constant 0 : i32
    %c0_i32_0 = arith.constant 0 : i32
    %c0_i32_1 = arith.constant 0 : i32
    return %c0_i32, %c0_i32_0 : i32, i32
  }
  func.func @transform_8(%arg0: i32) -> (i32, i32) {
    %c0_i32 = arith.constant 0 : i32
    %c0_i32_0 = arith.constant 0 : i32
    %c0_i32_1 = arith.constant 0 : i32
    return %c0_i32, %c0_i32_0 : i32, i32
  }
  func.func @transform_9(%arg0: i32) -> (i32, i32) {
    %c0_i32 = arith.constant 0 : i32
    %c0_i32_0 = arith.constant 0 : i32
    return %arg0, %c0_i32 : i32, i32
  }
}

</mosaic_0001>

<bundles_post_ra>
// kernel: policy_network_forward.1
= control target key start
LH: loop header
LB: loop body
LE: loop exit
PB: predicated region body
PF: predicated region fallthrough
CT: control target
= control target key end

     0   :  { %14 = vsyncpa [#allocation3], 0  ;;  %s1787_s0 = inlined_call_operand.hbm [shape: f32[8,32], index: 0, kind: input, shape index: {}]   ;;  %s1788_s1 = inlined_call_operand.hbm [shape: bf16[32,512], index: 1, kind: input, shape index: {}]   ;;  %s1789_s2 = inlined_call_operand.hbm [shape: f32[1,512], index: 2, kind: input, shape index: {}]   ;;  %s1790_s3 = inlined_call_operand.hbm [shape: bf16[512,256], index: 3, kind: input, shape index: {}]   ;;  %s1791_s4 = inlined_call_operand.hbm [shape: f32[1,256], index: 4, kind: input, shape index: {}]   ;;  %s1792_s5 = inlined_call_operand.hbm [shape: bf16[256,128], index: 5, kind: input, shape index: {}]   ;;  %s1793_s6 = inlined_call_operand.vmem [shape: f32[1,128], index: 6, kind: input, shape index: {}]   ;;  %s1794_s7 = inlined_call_operand.hbm [shape: bf16[128,128], index: 7, kind: input, shape index: {}]   ;;  %s1795_s8 = inlined_call_operand.vmem [shape: f32[1,128], index: 8, kind: input, shape index: {}]   ;;  %s1796_s9 = inlined_call_operand.vmem [shape: bf16[8,128], index: 9, kind: output, shape index: {}]  }
   0x1   :  { %15 = vsyncpa [#allocation5], 0 }
   0x2   :  { %16 = vsyncpa [#allocation8], 0  ;;  %s33_s11 = sshll.u32 %s1788_s1, 4  ;;  %s34_s11 = int_to_ptr.hbm [resolvable:$true] %s33_s11 }
   0x3   :  { %17 = vsyncpa [#allocation11], 0  ;;  %s1684_s12 = smov [#allocation4]   ;;  %s57_s16 = sshll.u32 %s1790_s3, 4  ;;  %s58_s16 = int_to_ptr.hbm [resolvable:$true] %s57_s16 }
   0x4   :  { %s35_s13 = sshll.u32 %s1684_s12, 4  ;;  %s1685_s17 = smov 256   ;;  %s36_s13 = int_to_ptr.vmem [resolvable:$true] %s35_s13 }
   0x5   :  { %s1686_s18 = smov 16   ;;  %s1687_s19 = smov [#allocation7]  }
   0x6   :  { %41 = dma.hbm_to_vmem [thread:$0]  %s34_s11, 1024, %s36_s13, [#allocation5], %s1685_s17, %s1685_s17, %s1686_s18  }
   0x7   :  { %s59_s20 = sshll.u32 %s1687_s19, 4  ;;  %s1688_s21 = smov 128   ;;  %s60_s20 = int_to_ptr.vmem [resolvable:$true] %s59_s20 }
   0x8   :  { %s1689_s22 = smov 8   ;;  %s81_s24 = sshll.u32 %s1792_s5, 4  ;;  %s82_s24 = int_to_ptr.hbm [resolvable:$true] %s81_s24 }
   0x9   :  { %65 = dma.hbm_to_vmem [thread:$0]  %s58_s16, 8192, %s60_s20, [#allocation8], %s1688_s21, %s1688_s21, %s1689_s22  }
   0xa   :  { %s1690_s25 = smov [#allocation10]   ;;  %s23_s28 = sshll.u32 %s1787_s0, 4  ;;  %s24_s28 = int_to_ptr.hbm [resolvable:$true] %s23_s28 }
   0xb   :  { %s83_s26 = sshll.u32 %s1690_s25, 4  ;;  %s1691_s29 = smov 64   ;;  %s84_s26 = int_to_ptr.vmem [resolvable:$true] %s83_s26 }
   0xc   :  { %s1692_s30 = smov 4   ;;  %s1693_s10 = smov [#allocation2]  }
   0xd   :  { %89 = dma.hbm_to_vmem [thread:$0]  %s82_s24, 2048, %s84_s26, [#allocation11], %s1691_s29, %s1691_s29, %s1692_s30  }
   0xe   :  { %s25_s11 = sshll.u32 %s1693_s10, 4  ;;  %s47_s14 = sshll.u32 %s1789_s2, 4  ;;  %s26_s11 = int_to_ptr.vmem [resolvable:$true] %s25_s11  ;;  %s48_s14 = int_to_ptr.hbm [resolvable:$true] %s47_s14 }
   0xf   :  { %28 = dma.hbm_to_vmem [thread:$0]  %s24_s28, 128, %s26_s11, [#allocation3]  }
  0x10   :  { %s71_s16 = sshll.u32 %s1791_s4, 4  ;;  %s1694_s17 = smov [#allocation6]   ;;  %s72_s16 = int_to_ptr.hbm [resolvable:$true] %s71_s16 }
  0x11   :  { %s49_s18 = sshll.u32 %s1694_s17, 4  ;;  %s1695_s0 = smov [#allocation9]   ;;  %s50_s18 = int_to_ptr.vmem [resolvable:$true] %s49_s18 }
  0x12   :  { %52 = dma.hbm_to_vmem [thread:$0]  %s48_s14, 64, %s50_s18, [#allocation5]  }
  0x13   :  { %s73_s19 = sshll.u32 %s1695_s0, 4  ;;  %s96_s22 = sshll.u32 %s1794_s7, 4  ;;  %s74_s19 = int_to_ptr.vmem [resolvable:$true] %s73_s19  ;;  %s97_s22 = int_to_ptr.hbm [resolvable:$true] %s96_s22 }
  0x14   :  { %76 = dma.hbm_to_vmem [thread:$0]  %s72_s16, 32, %s74_s19, [#allocation8]  }
  0x15   :  { %s1696_s2 = smov [#allocation12]  }
  0x16   :  { %s98_s1 = sshll.u32 %s1696_s2, 4  ;;  %s99_s1 = int_to_ptr.vmem [resolvable:$true] %s98_s1 }
  0x17   :  { %104 = dma.hbm_to_vmem [thread:$0]  %s97_s22, 1024, %s99_s1, [#allocation11], %s1691_s29, %s1691_s29, %s1692_s30  }
  0x18   :  { %1676 = dma.done.wait [#allocation3], 128  }
  0x19   :  { %1677 = vsyncadd [#allocation3], 4294967168 }
  0x1a   :  { %1678 = dma.done.wait [#allocation5], 1088  }
  0x1b   :  { %1679 = vsyncadd [#allocation5], 4294966208 }
  0x1c   :  { %1680 = dma.done.wait [#allocation8], 8224  }
  0x1d   :  { %1681 = vsyncadd [#allocation8], 4294959072 }
  0x1e   :  { %1682 = dma.done.wait [#allocation11], 3072  }
  0x1f   :  { %1683 = vsyncadd [#allocation11], 4294964224  ;;  %v1027_v0 = vld [vmem:[#allocation4 + $0x20] sm:$0xf]  ;;  %v1403_v1 = vld [vmem:[#allocation4 + $0x2c] sm:$0xf0] }
  0x20   :  { %v1401_v2 = vld [vmem:[#allocation4 + $0x24] sm:$0xf]  ;;  %v1028_v3 = vor.u32 %v1403_v1, %v1027_v0  ;;  %v1029_v4 = vld [vmem:[#allocation4 + $0x30] sm:$0xf0]  ;;  %v1035_v5 = vld [vmem:[#allocation4 + $0x28] sm:$0xf] }
  0x21   :  { %v1404_v6 = vld [vmem:[#allocation4 + $0x34] sm:$0xf0]  ;;  %v1032_v7 = vor.u32 %v1401_v2, %v1029_v4  ;;  %v1011_v9 = vld [vmem:[#allocation4] sm:$0xf]  ;;  %v1399_v10 = vld [vmem:[#allocation4 + $0xc] sm:$0xf0] }
  0x22   :  { %v1036_v8 = vor.u32 %v1404_v6, %v1035_v5  ;;  %v1397_v11 = vld [vmem:[#allocation4 + $0x4] sm:$0xf]  ;;  %206 = vmatpush.bf16.msra.mxu3 %v1028_v3  ;;  %v1012_v12 = vor.u32 %v1399_v10, %v1011_v9  ;;  %v1013_v13 = vld [vmem:[#allocation4 + $0x10] sm:$0xf0]  ;;  %v1019_v14 = vld [vmem:[#allocation4 + $0x8] sm:$0xf] }
  0x23   :  { %v1400_v15 = vld [vmem:[#allocation4 + $0x14] sm:$0xf0]  ;;  %219 = vmatpush.bf16.msra.mxu1 %v1032_v7  ;;  %v1016_v16 = vor.u32 %v1397_v11, %v1013_v13  ;;  %vm196_vm0 = vcmask 261120   ;;  %v1402_v19 = vld [vmem:[#allocation4 + $0x2c] sm:$0xf] }
  0x24   :  { %232 = vmatpush.bf16.msra.mxu2 %v1036_v8  ;;  %v1020_v17 = vor.u32 %v1400_v15, %v1019_v14  ;;  %v136_v18 = vld [vmem:[#allocation2] sm:$0xff]  ;;  %v1398_v22 = vld [vmem:[#allocation4 + $0xc] sm:$0xf]  ;;  %v1167_v24 = vld [vmem:[#allocation7 + $0xf0] sm:$0xf] }
  0x25   :  { %v1037_v20 = vld [vmem:[#allocation4 + $0x38] sm:$0xf0]  ;;  %v1768_v25 = vpack.c.bf16 %v136_v18, %v136_v18  ;;  %v1159_v27 = vld [vmem:[#allocation7 + $0xe0] sm:$0xf]  ;;  %v1434_v28 = vld [vmem:[#allocation7 + $0xe4] sm:$0xf0] }
  0x26   :  { %v1040_v21 = vor.u32 %v1402_v19, %v1037_v20  ;;  %v1021_v23 = vld [vmem:[#allocation4 + $0x18] sm:$0xf0]  ;;  %207 = vmatpush.bf16.msra.mxu3 %v1012_v12  ;;  %v1103_v30 = vld [vmem:[#allocation7 + $0x70] sm:$0xf]  ;;  %v1160_v36 = vor.u32 %v1434_v28, %v1159_v27  ;;  %v1095_v38 = vld [vmem:[#allocation7 + $0x60] sm:$0xf] }
  0x27   :  { %v1436_v26 = vld [vmem:[#allocation7 + $0xf4] sm:$0xf0]  ;;  %v1231_v32 = vld [vmem:[#allocation7 + $0x170] sm:$0xf]  ;;  %220 = vmatpush.bf16.msra.mxu1 %v1016_v16  ;;  %v1024_v35 = vor.u32 %v1398_v22, %v1021_v23  ;;  %v1418_v39 = vld [vmem:[#allocation7 + $0x64] sm:$0xf0] }
  0x28   :  { %v1168_v29 = vor.u32 %v1436_v26, %v1167_v24  ;;  %v1420_v31 = vld [vmem:[#allocation7 + $0x74] sm:$0xf0]  ;;  %233 = vmatpush.bf16.msra.mxu2 %v1020_v17  ;;  %v1223_v40 = vld [vmem:[#allocation7 + $0x160] sm:$0xf]  ;;  %v1151_v41 = vld [vmem:[#allocation7 + $0xd0] sm:$0xf]  ;;  %v1096_v43 = vor.u32 %v1418_v39, %v1095_v38 }
  0x29   :  { %v1104_v33 = vor.u32 %v1420_v31, %v1103_v30  ;;  %v1452_v34 = vld [vmem:[#allocation7 + $0x174] sm:$0xf0]  ;;  %1041 = vmatmul.msk.bf16.vlgmr.msra.gmra.mxu3 %vm196_vm0, %v1768_v25  ;;  %v1450_v44 = vld [vmem:[#allocation7 + $0x164] sm:$0xf0]  ;;  %v1087_v45 = vld [vmem:[#allocation7 + $0x50] sm:$0xf] }
  0x2a   :  { %245 = vmatpush.bf16.msrb.mxu3 %v1040_v21  ;;  %v1232_v37 = vor.u32 %v1452_v34, %v1231_v32  ;;  %v1432_v42 = vld [vmem:[#allocation7 + $0xd4] sm:$0xf0]  ;;  %1042 = vmatmul.msk.bf16.vlgmr.msra.gmra.mxu1 %vm196_vm0, %v1768_v25  ;;  %v1224_v47 = vor.u32 %v1450_v44, %v1223_v40  ;;  %v1215_v49 = vld [vmem:[#allocation7 + $0x150] sm:$0xf]  ;;  %v1143_v51 = vld [vmem:[#allocation7 + $0xc0] sm:$0xf] }
  0x2b   :  { %663 = vmatpush.bf16.msrb.mxu1 %v1168_v29  ;;  %650 = vmatpush.bf16.msra.mxu0 %v1104_v33  ;;  %v1416_v46 = vld [vmem:[#allocation7 + $0x54] sm:$0xf0]  ;;  %v1152_v48 = vor.u32 %v1432_v42, %v1151_v41  ;;  %v1430_v52 = vld [vmem:[#allocation7 + $0xc4] sm:$0xf0]  ;;  %v1079_v54 = vld [vmem:[#allocation7 + $0x40] sm:$0xf] }
  0x2c   :  { %1043 = vmatmul.msk.bf16.vlgmr.msra.gmra.mxu2 %vm196_vm0, %v1768_v25  ;;  %v1448_v50 = vld [vmem:[#allocation7 + $0x154] sm:$0xf0]  ;;  %v1088_v53 = vor.u32 %v1416_v46, %v1087_v45  ;;  %v1414_v55 = vld [vmem:[#allocation7 + $0x44] sm:$0xf0]  ;;  %v1295_v57 = vld [vmem:[#allocation7 + $0x1f0] sm:$0xf]  ;;  %v1144_v59 = vor.u32 %v1430_v52, %v1143_v51 }
  0x2d   :  { %676 = vmatpush.bf16.msrb.mxu2 %v1232_v37  ;;  %v1216_v56 = vor.u32 %v1448_v50, %v1215_v49  ;;  %v1468_v58 = vld [vmem:[#allocation7 + $0x1f4] sm:$0xf0]  ;;  %v1207_v60 = vld [vmem:[#allocation7 + $0x140] sm:$0xf]  ;;  %v1446_v61 = vld [vmem:[#allocation7 + $0x144] sm:$0xf0]  ;;  %v1080_v1 = vor.u32 %v1414_v55, %v1079_v54 }
  0x2e   :  { %246 = vmatpush.bf16.msrb.mxu3 %v1024_v35  ;;  %v1296_v62 = vor.u32 %v1468_v58, %v1295_v57  ;;  %v1135_v63 = vld [vmem:[#allocation7 + $0xb0] sm:$0xf]  ;;  %v1428_v0 = vld [vmem:[#allocation7 + $0xb4] sm:$0xf0]  ;;  %v1287_v4 = vld [vmem:[#allocation7 + $0x1e0] sm:$0xf]  ;;  %v1208_v6 = vor.u32 %v1446_v61, %v1207_v60 }
  0x2f   :  { %664 = vmatpush.bf16.msrb.mxu1 %v1160_v36  ;;  %651 = vmatpush.bf16.msra.mxu0 %v1096_v43  ;;  %v1071_v2 = vld [vmem:[#allocation7 + $0x30] sm:$0xf]  ;;  %v1412_v3 = vld [vmem:[#allocation7 + $0x34] sm:$0xf0]  ;;  %v1466_v5 = vld [vmem:[#allocation7 + $0x1e4] sm:$0xf0]  ;;  %v1136_v8 = vor.u32 %v1428_v0, %v1135_v63 }
  0x30   :  { %v1288_v7 = vor.u32 %v1466_v5, %v1287_v4  ;;  %v1127_v9 = vld [vmem:[#allocation7 + $0xa0] sm:$0xf]  ;;  %v1199_v10 = vld [vmem:[#allocation7 + $0x130] sm:$0xf]  ;;  %v1444_v11 = vld [vmem:[#allocation7 + $0x134] sm:$0xf0]  ;;  %v1072_v13 = vor.u32 %v1412_v3, %v1071_v2 }
  0x31   :  { %677 = vmatpush.bf16.msrb.mxu2 %v1224_v47  ;;  %v1426_v12 = vld [vmem:[#allocation7 + $0xa4] sm:$0xf0]  ;;  %v1279_v14 = vld [vmem:[#allocation7 + $0x1d0] sm:$0xf]  ;;  %v1464_v15 = vld [vmem:[#allocation7 + $0x1d4] sm:$0xf0]  ;;  %v1200_v19 = vor.u32 %v1444_v11, %v1199_v10 }
  0x32   :  { %689 = vmatpush.bf16.msra.mxu3 %v1296_v62  ;;  %v1063_v16 = vld [vmem:[#allocation7 + $0x20] sm:$0xf]  ;;  %v1410_v17 = vld [vmem:[#allocation7 + $0x24] sm:$0xf0]  ;;  %v1280_v18 = vor.u32 %v1464_v15, %v1279_v14  ;;  %v1128_v21 = vor.u32 %v1426_v12, %v1127_v9  ;;  %v1119_v26 = vld [vmem:[#allocation7 + $0x90] sm:$0xf] }
  0x33   :  { %665 = vmatpush.bf16.msrb.mxu1 %v1152_v48  ;;  %652 = vmatpush.bf16.msra.mxu0 %v1088_v53  ;;  %v1191_v20 = vld [vmem:[#allocation7 + $0x120] sm:$0xf]  ;;  %v1442_v22 = vld [vmem:[#allocation7 + $0x124] sm:$0xf0]  ;;  %v1424_v27 = vld [vmem:[#allocation7 + $0x94] sm:$0xf0]  ;;  %v1064_v28 = vor.u32 %v1410_v17, %v1063_v16 }
  0x34   :  { %v1271_v23 = vld [vmem:[#allocation7 + $0x1c0] sm:$0xf]  ;;  %v1462_v24 = vld [vmem:[#allocation7 + $0x1c4] sm:$0xf0]  ;;  %v1055_v29 = vld [vmem:[#allocation7 + $0x10] sm:$0xf]  ;;  %v1192_v32 = vor.u32 %v1442_v22, %v1191_v20  ;;  %v1120_v33 = vor.u32 %v1424_v27, %v1119_v26 }
  0x35   :  { %678 = vmatpush.bf16.msrb.mxu2 %v1216_v56  ;;  %v1408_v30 = vld [vmem:[#allocation7 + $0x14] sm:$0xf0]  ;;  %v1272_v31 = vor.u32 %v1462_v24, %v1271_v23  ;;  %v1183_v34 = vld [vmem:[#allocation7 + $0x110] sm:$0xf]  ;;  %v1111_v36 = vld [vmem:[#allocation7 + $0x80] sm:$0xf] }
  0x36   :  { %690 = vmatpush.bf16.msra.mxu3 %v1288_v7  ;;  %v1440_v35 = vld [vmem:[#allocation7 + $0x114] sm:$0xf0]  ;;  %v1422_v37 = vld [vmem:[#allocation7 + $0x84] sm:$0xf0]  ;;  %v1435_v38 = vld [vmem:[#allocation7 + $0xf4] sm:$0xf]  ;;  %v1056_v39 = vor.u32 %v1408_v30, %v1055_v29 }
  0x37   :  { %666 = vmatpush.bf16.msrb.mxu1 %v1144_v59  ;;  %653 = vmatpush.bf16.msra.mxu0 %v1080_v1  ;;  %v1047_v40 = vld [vmem:[#allocation7] sm:$0xf]  ;;  %v1406_v41 = vld [vmem:[#allocation7 + $0x4] sm:$0xf0]  ;;  %v1184_v42 = vor.u32 %v1440_v35, %v1183_v34  ;;  %v1419_v43 = vld [vmem:[#allocation7 + $0x74] sm:$0xf]  ;;  %v1112_v45 = vor.u32 %v1422_v37, %v1111_v36 }
  0x38   :  { %v1105_v44 = vld [vmem:[#allocation7 + $0x78] sm:$0xf0]  ;;  %v1175_v46 = vld [vmem:[#allocation7 + $0x100] sm:$0xf]  ;;  %v1438_v47 = vld [vmem:[#allocation7 + $0x104] sm:$0xf0]  ;;  %v1048_v49 = vor.u32 %v1406_v41, %v1047_v40 }
  0x39   :  { %679 = vmatpush.bf16.msrb.mxu2 %v1208_v6  ;;  %1044 = vmatmul.msk.bf16.vlgmr.msrb.gmra.mxu3 %vm196_vm0, %v1768_v25  ;;  %v1169_v25 = vld [vmem:[#allocation7 + $0xf8] sm:$0xf0]  ;;  %v1451_v50 = vld [vmem:[#allocation7 + $0x174] sm:$0xf]  ;;  %v1433_v52 = vld [vmem:[#allocation7 + $0xe4] sm:$0xf]  ;;  %v1108_v54 = vor.u32 %v1419_v43, %v1105_v44  ;;  %v1176_v55 = vor.u32 %v1438_v47, %v1175_v46 }
  0x3a   :  { %691 = vmatpush.bf16.msra.mxu3 %v1280_v18  ;;  %v1172_v48 = vor.u32 %v1435_v38, %v1169_v25  ;;  %v1233_v51 = vld [vmem:[#allocation7 + $0x178] sm:$0xf0]  ;;  %v1161_v53 = vld [vmem:[#allocation7 + $0xe8] sm:$0xf0]  ;;  %v1431_v58 = vld [vmem:[#allocation7 + $0xd4] sm:$0xf] }
  0x3b   :  { %667 = vmatpush.bf16.msrb.mxu1 %v1136_v8  ;;  %654 = vmatpush.bf16.msra.mxu0 %v1072_v13  ;;  %v1236_v56 = vor.u32 %v1451_v50, %v1233_v51  ;;  %v1164_v57 = vor.u32 %v1433_v52, %v1161_v53  ;;  %v1153_v59 = vld [vmem:[#allocation7 + $0xd8] sm:$0xf0]  ;;  %v1263_v61 = vld [vmem:[#allocation7 + $0x1b0] sm:$0xf]  ;;  %v1460_v62 = vld [vmem:[#allocation7 + $0x1b4] sm:$0xf0] }
  0x3c   :  { %v1156_v60 = vor.u32 %v1431_v58, %v1153_v59  ;;  %v1264_v63 = vor.u32 %v1460_v62, %v1263_v61  ;;  %v1417_v0 = vld [vmem:[#allocation7 + $0x64] sm:$0xf]  ;;  %v1097_v1 = vld [vmem:[#allocation7 + $0x68] sm:$0xf0]  ;;  %v1255_v9 = vld [vmem:[#allocation7 + $0x1a0] sm:$0xf] }
  0x3d   :  { %680 = vmatpush.bf16.msrb.mxu2 %v1200_v19  ;;  %v1449_v2 = vld [vmem:[#allocation7 + $0x164] sm:$0xf]  ;;  %v1100_v3 = vor.u32 %v1417_v0, %v1097_v1  ;;  %v1225_v4 = vld [vmem:[#allocation7 + $0x168] sm:$0xf0]  ;;  %v1458_v10 = vld [vmem:[#allocation7 + $0x1a4] sm:$0xf0] }
  0x3e   :  { %692 = vmatpush.bf16.msra.mxu3 %v1272_v31  ;;  %v1228_v5 = vor.u32 %v1449_v2, %v1225_v4  ;;  %v1429_v6 = vld [vmem:[#allocation7 + $0xc4] sm:$0xf]  ;;  %v1145_v7 = vld [vmem:[#allocation7 + $0xc8] sm:$0xf0]  ;;  %v1256_v11 = vor.u32 %v1458_v10, %v1255_v9  ;;  %v1415_v12 = vld [vmem:[#allocation7 + $0x54] sm:$0xf] }
  0x3f   :  { %668 = vmatpush.bf16.msrb.mxu1 %v1128_v21  ;;  %655 = vmatpush.bf16.msra.mxu0 %v1064_v28  ;;  %v1148_v8 = vor.u32 %v1429_v6, %v1145_v7  ;;  %v1089_v13 = vld [vmem:[#allocation7 + $0x58] sm:$0xf0]  ;;  %v1447_v14 = vld [vmem:[#allocation7 + $0x154] sm:$0xf]  ;;  %v1247_v21 = vld [vmem:[#allocation7 + $0x190] sm:$0xf] }
  0x40   :  { %v1092_v15 = vor.u32 %v1415_v12, %v1089_v13  ;;  %v1217_v16 = vld [vmem:[#allocation7 + $0x158] sm:$0xf0]  ;;  %v1427_v18 = vld [vmem:[#allocation7 + $0xb4] sm:$0xf]  ;;  %v1456_v22 = vld [vmem:[#allocation7 + $0x194] sm:$0xf0] }
  0x41   :  { %681 = vmatpush.bf16.msrb.mxu2 %v1192_v32  ;;  %v1220_v17 = vor.u32 %v1447_v14, %v1217_v16  ;;  %v1137_v19 = vld [vmem:[#allocation7 + $0xb8] sm:$0xf0]  ;;  %v1248_v23 = vor.u32 %v1456_v22, %v1247_v21  ;;  %v1413_v24 = vld [vmem:[#allocation7 + $0x44] sm:$0xf]  ;;  %v1081_v26 = vld [vmem:[#allocation7 + $0x48] sm:$0xf0] }
  0x42   :  { %693 = vmatpush.bf16.msra.mxu3 %v1264_v63  ;;  %v1140_v20 = vor.u32 %v1427_v18, %v1137_v19  ;;  %v1445_v27 = vld [vmem:[#allocation7 + $0x144] sm:$0xf]  ;;  %v1084_v28 = vor.u32 %v1413_v24, %v1081_v26  ;;  %v1209_v29 = vld [vmem:[#allocation7 + $0x148] sm:$0xf0]  ;;  %v1239_v34 = vld [vmem:[#allocation7 + $0x180] sm:$0xf] }
  0x43   :  { %669 = vmatpush.bf16.msrb.mxu1 %v1120_v33  ;;  %656 = vmatpush.bf16.msra.mxu0 %v1056_v39  ;;  %v1212_v30 = vor.u32 %v1445_v27, %v1209_v29  ;;  %v1425_v31 = vld [vmem:[#allocation7 + $0xa4] sm:$0xf]  ;;  %v1129_v32 = vld [vmem:[#allocation7 + $0xa8] sm:$0xf0]  ;;  %v1454_v35 = vld [vmem:[#allocation7 + $0x184] sm:$0xf0] }
  0x44   :  { %v1132_v33 = vor.u32 %v1425_v31, %v1129_v32  ;;  %v1240_v36 = vor.u32 %v1454_v35, %v1239_v34  ;;  %v1411_v37 = vld [vmem:[#allocation7 + $0x34] sm:$0xf]  ;;  %v1073_v38 = vld [vmem:[#allocation7 + $0x38] sm:$0xf0]  ;;  %v1409_v47 = vld [vmem:[#allocation7 + $0x24] sm:$0xf] }
  0x45   :  { %682 = vmatpush.bf16.msrb.mxu2 %v1184_v42  ;;  %v1443_v39 = vld [vmem:[#allocation7 + $0x134] sm:$0xf]  ;;  %v1076_v25 = vor.u32 %v1411_v37, %v1073_v38  ;;  %v1201_v40 = vld [vmem:[#allocation7 + $0x138] sm:$0xf0]  ;;  %v1441_v50 = vld [vmem:[#allocation7 + $0x124] sm:$0xf] }
  0x46   :  { %694 = vmatpush.bf16.msra.mxu3 %v1256_v11  ;;  %v1467_v41 = vld [vmem:[#allocation7 + $0x1f4] sm:$0xf]  ;;  %v1297_v42 = vld [vmem:[#allocation7 + $0x1f8] sm:$0xf0]  ;;  %v1204_v43 = vor.u32 %v1443_v39, %v1201_v40  ;;  %v1193_v51 = vld [vmem:[#allocation7 + $0x128] sm:$0xf0] }
  0x47   :  { %670 = vmatpush.bf16.msrb.mxu1 %v1112_v45  ;;  %657 = vmatpush.bf16.msra.mxu0 %v1048_v49  ;;  %v1300_v44 = vor.u32 %v1467_v41, %v1297_v42  ;;  %v1423_v45 = vld [vmem:[#allocation7 + $0x94] sm:$0xf]  ;;  %v1121_v46 = vld [vmem:[#allocation7 + $0x98] sm:$0xf0]  ;;  %v1065_v49 = vld [vmem:[#allocation7 + $0x28] sm:$0xf0]  ;;  %v1196_v53 = vor.u32 %v1441_v50, %v1193_v51 }
  0x48   :  { %v1068_v52 = vor.u32 %v1409_v47, %v1065_v49  ;;  %v1113_v58 = vld [vmem:[#allocation7 + $0x88] sm:$0xf0]  ;;  %v1057_v61 = vld [vmem:[#allocation7 + $0x18] sm:$0xf0]  ;;  %v1439_v62 = vld [vmem:[#allocation7 + $0x114] sm:$0xf] }
  0x49   :  { %683 = vmatpush.bf16.msrb.mxu2 %v1176_v55  ;;  %v1289_v55 = vld [vmem:[#allocation7 + $0x1e8] sm:$0xf0]  ;;  %v1185_v0 = vld [vmem:[#allocation7 + $0x118] sm:$0xf0]  ;;  %v1463_v1 = vld [vmem:[#allocation7 + $0x1d4] sm:$0xf] }
  0x4a   :  { %695 = vmatpush.bf16.msra.mxu3 %v1248_v23  ;;  %v1281_v2 = vld [vmem:[#allocation7 + $0x1d8] sm:$0xf0]  ;;  %v1049_v6 = vld [vmem:[#allocation7 + $0x8] sm:$0xf0]  ;;  %v1437_v7 = vld [vmem:[#allocation7 + $0x104] sm:$0xf] }
  0x4b   :  { %715 = vmatpush.bf16.msra.mxu1 %v1172_v48  ;;  %702 = vmatpush.bf16.msrb.mxu0 %v1108_v54  ;;  %v1124_v48 = vor.u32 %v1423_v45, %v1121_v46  ;;  %v1465_v54 = vld [vmem:[#allocation7 + $0x1e4] sm:$0xf]  ;;  %v1284_v4 = vor.u32 %v1463_v1, %v1281_v2  ;;  %v1177_v9 = vld [vmem:[#allocation7 + $0x108] sm:$0xf0]  ;;  %v146_v14 = vld [vmem:[#allocation6] sm:$0xf] }
  0x4c   :  { %v1461_v10 = vld [vmem:[#allocation7 + $0x1c4] sm:$0xf]  ;;  %v1273_v11 = vld [vmem:[#allocation7 + $0x1c8] sm:$0xf0]  ;;  %v1180_v12 = vor.u32 %v1437_v7, %v1177_v9  ;;  %v1265_v16 = vld [vmem:[#allocation7 + $0x1b8] sm:$0xf0] }
  0x4d   :  { %728 = vmatpush.bf16.msra.mxu2 %v1236_v56  ;;  %v1421_v56 = vld [vmem:[#allocation7 + $0x84] sm:$0xf]  ;;  %v1276_v13 = vor.u32 %v1461_v10, %v1273_v11  ;;  %v149_v18 = vperm.slane %v146_v14, 1  ;;  %v1455_v23 = vld [vmem:[#allocation7 + $0x194] sm:$0xf]  ;;  %v148_v27 = vperm.slane %v146_v14, 0 }
  0x4e   :  { %696 = vmatpush.bf16.msra.mxu3 %v1240_v36  ;;  %v1116_v59 = vor.u32 %v1421_v56, %v1113_v58  ;;  %v1457_v19 = vld [vmem:[#allocation7 + $0x1a4] sm:$0xf]  ;;  %v1249_v24 = vld [vmem:[#allocation7 + $0x198] sm:$0xf0]  ;;  %v150_v29 = vperm.slane %v146_v14, 2  ;;  %v151_v45 = vperm.slane %v146_v14, 3 }
  0x4f   :  { %716 = vmatpush.bf16.msra.mxu1 %v1164_v57  ;;  %703 = vmatpush.bf16.msrb.mxu0 %v1100_v3  ;;  %v1292_v57 = vor.u32 %v1465_v54, %v1289_v55  ;;  %v1188_v3 = vor.u32 %v1439_v62, %v1185_v0  ;;  %v1453_v31 = vld [vmem:[#allocation7 + $0x184] sm:$0xf]  ;;  %v1241_v32 = vld [vmem:[#allocation7 + $0x188] sm:$0xf0]  ;;  %v1476_v51 = vld [vmem:[#allocation10 + $0x38] sm:$0xff] }
  0x50   :  { %v1244_v38 = vor.u32 %v1453_v31, %v1241_v32  ;;  %v1473_v54 = vld [vmem:[#allocation10 + $0x20] sm:$0xff]  ;;  %v1472_v55 = vld [vmem:[#allocation10 + $0x18] sm:$0xff]  ;;  %v1483_v58 = vld [vmem:[#allocation10 + $0x70] sm:$0xff] }
  0x51   :  { %729 = vmatpush.bf16.msra.mxu2 %v1228_v5  ;;  %v1405_v5 = vld [vmem:[#allocation7 + $0x4] sm:$0xf]  ;;  %v1484_v56 = vld [vmem:[#allocation10 + $0x78] sm:$0xff]  ;;  %v1479_v1 = vld [vmem:[#allocation10 + $0x50] sm:$0xff] }
  0x52   :  { %741 = vmatpush.bf16.msrb.mxu3 %v1300_v44  ;;  %v1481_v62 = vld [vmem:[#allocation10 + $0x60] sm:$0xff]  ;;  %v1480_v0 = vld [vmem:[#allocation10 + $0x58] sm:$0xff] }
  0x53   :  { %717 = vmatpush.bf16.msra.mxu1 %v1156_v60  ;;  %704 = vmatpush.bf16.msrb.mxu0 %v1092_v15  ;;  %v1407_v60 = vld [vmem:[#allocation7 + $0x14] sm:$0xf]  ;;  %v1492_v11 = vld [vmem:[#allocation12 + $0x38] sm:$0xff] }
  0x54   :  { %v1060_v63 = vor.u32 %v1407_v60, %v1057_v61  ;;  %v1459_v15 = vld [vmem:[#allocation7 + $0x1b4] sm:$0xf]  ;;  %v1482_v60 = vld [vmem:[#allocation10 + $0x68] sm:$0xff]  ;;  %v1469_v61 = vld [vmem:[#allocation10] sm:$0xff] }
  0x55   :  { %730 = vmatpush.bf16.msra.mxu2 %v1220_v17  ;;  %v1268_v17 = vor.u32 %v1459_v15, %v1265_v16  ;;  %v1491_v15 = vld [vmem:[#allocation12 + $0x30] sm:$0xff] }
  0x56   :  { %742 = vmatpush.bf16.msrb.mxu3 %v1292_v57  ;;  %v1471_v57 = vld [vmem:[#allocation10 + $0x10] sm:$0xff] }
  0x57   :  { %718 = vmatpush.bf16.msra.mxu1 %v1148_v8  ;;  %705 = vmatpush.bf16.msrb.mxu0 %v1084_v28  ;;  %v1052_v8 = vor.u32 %v1405_v5, %v1049_v6  ;;  %v324_v6 = vld [vmem:[#allocation9] sm:$0x3] }
  0x58   :  { %v326_v9 = vperm.slane %v324_v6, 0 }
  0x59   :  { %731 = vmatpush.bf16.msra.mxu2 %v1212_v30  ;;  %v1252_v30 = vor.u32 %v1455_v23, %v1249_v24  ;;  %v327_v24 = vperm.slane %v324_v6, 1 }
  0x5a   :  { %743 = vmatpush.bf16.msrb.mxu3 %v1284_v4  ;;  %v1478_v4 = vld [vmem:[#allocation10 + $0x48] sm:$0xff] }
  0x5b   :  { %719 = vmatpush.bf16.msra.mxu1 %v1140_v20  ;;  %706 = vmatpush.bf16.msrb.mxu0 %v1076_v25  ;;  %v1257_v20 = vld [vmem:[#allocation7 + $0x1a8] sm:$0xf0] }
  0x5c   :  { %v1260_v21 = vor.u32 %v1457_v19, %v1257_v20 }
  0x5d   :  { %732 = vmatpush.bf16.msra.mxu2 %v1204_v43 }
  0x5e   :  { %744 = vmatpush.bf16.msrb.mxu3 %v1276_v13 }
  0x5f   :  { %720 = vmatpush.bf16.msra.mxu1 %v1132_v33  ;;  %707 = vmatpush.bf16.msrb.mxu0 %v1068_v52  ;;  %v1475_v52 = vld [vmem:[#allocation10 + $0x30] sm:$0xff] }
  0x61   :  { %733 = vmatpush.bf16.msra.mxu2 %v1196_v53  ;;  %v1474_v53 = vld [vmem:[#allocation10 + $0x28] sm:$0xff] }
  0x62   :  { %745 = vmatpush.bf16.msrb.mxu3 %v1268_v17 }
  0x63   :  { %721 = vmatpush.bf16.msra.mxu1 %v1124_v48  ;;  %708 = vmatpush.bf16.msrb.mxu0 %v1060_v63 }
  0x65   :  { %734 = vmatpush.bf16.msra.mxu2 %v1188_v3 }
  0x66   :  { %746 = vmatpush.bf16.msrb.mxu3 %v1260_v21 }
  0x67   :  { %722 = vmatpush.bf16.msra.mxu1 %v1116_v59  ;;  %709 = vmatpush.bf16.msrb.mxu0 %v1052_v8  ;;  %v1470_v59 = vld [vmem:[#allocation10 + $0x8] sm:$0xff]  ;;  %v1477_v8 = vld [vmem:[#allocation10 + $0x40] sm:$0xff] }
  0x69   :  { %735 = vmatpush.bf16.msra.mxu2 %v1180_v12 }
  0x6a   :  { %747 = vmatpush.bf16.msrb.mxu3 %v1252_v30 }
  0x6e   :  { %748 = vmatpush.bf16.msrb.mxu3 %v1244_v38  ;;  %v1489_v38 = vld [vmem:[#allocation12 + $0x20] sm:$0xff] }
  0xa7   :  { %v222_v22 = vpop.f32.mrf.mxu1 }
  0xa8   :  { %v223_v26 = vadd.f32 %v222_v22, %v149_v18 }
  0xaa   :  { %v253_v28 = vmax.f32 %v223_v26, 0.0 }
  0xac   :  { %v257_v33 = vpack.c.bf16 %v253_v28, %v253_v28  ;;  %v209_v34 = vpop.f32.mrf.mxu3 }
  0xad   :  { %v210_v35 = vadd.f32 %v209_v34, %v148_v27 }
  0xae   :  { %671 = vmatmul.bf16.vlgmr.msrb.gmra.mxu1 %v257_v33 }
  0xaf   :  { %v235_v36 = vpop.f32.mrf.mxu2  ;;  %v252_v39 = vmax.f32 %v210_v35, 0.0  ;;  %v224_v25 = vpop.f32.mrf.mxu1  ;;  %903 = vmatpush.bf16.msrb.mxu1 %v1484_v56 }
  0xb0   :  { %v236_v37 = vadd.f32 %v235_v36, %v150_v29  ;;  %v1487_v25 = vld [vmem:[#allocation12 + $0x10] sm:$0xff] }
  0xb1   :  { %v256_v41 = vpack.c.bf16 %v252_v39, %v252_v39  ;;  %v1488_v39 = vld [vmem:[#allocation12 + $0x18] sm:$0xff] }
  0xb2   :  { %v254_v40 = vmax.f32 %v236_v37, 0.0  ;;  %v1490_v37 = vld [vmem:[#allocation12 + $0x28] sm:$0xff] }
  0xb3   :  { %658 = vmatmul.bf16.vlgmr.msra.gmra.mxu0 %v256_v41  ;;  %904 = vmatpush.bf16.msrb.mxu1 %v1483_v58 }
  0xb4   :  { %v258_v42 = vpack.c.bf16 %v254_v40, %v254_v40  ;;  %v211_v43 = vpop.f32.mrf.mxu3  ;;  %890 = vmatpush.bf16.msra.mxu0 %v1476_v51  ;;  %v1486_v40 = vld [vmem:[#allocation12 + $0x8] sm:$0xff]  ;;  %v1507_v51 = vld [vmem:[%s1795_s8] ss:$0 sm:$0xff] }
  0xb6   :  { %684 = vmatmul.bf16.vlgmr.msrb.gmra.mxu2 %v258_v42 }
  0xb7   :  { %v237_v44 = vpop.f32.mrf.mxu2  ;;  %905 = vmatpush.bf16.msrb.mxu1 %v1482_v60  ;;  %986 = vmatpush.bf16.msrb.mxu2 %v1492_v11 }
  0xb8   :  { %891 = vmatpush.bf16.msra.mxu0 %v1475_v52  ;;  %v1506_v44 = vld [vmem:[%s1793_s6] ss:$0 sm:$0xff] }
  0xbb   :  { %906 = vmatpush.bf16.msrb.mxu1 %v1481_v62  ;;  %987 = vmatpush.bf16.msrb.mxu2 %v1491_v15 }
  0xbc   :  { %v248_v46 = vpop.f32.mrf.mxu3  ;;  %892 = vmatpush.bf16.msra.mxu0 %v1474_v53 }
  0xbd   :  { %v249_v47 = vadd.f32 %v248_v46, %v151_v45 }
  0xbe   :  { %723 = vmatmul.bf16.vlgmr.msra.gmra.mxu1 %v257_v33 }
  0xbf   :  { %v255_v48 = vmax.f32 %v249_v47, 0.0  ;;  %907 = vmatpush.bf16.msrb.mxu1 %v1480_v0  ;;  %988 = vmatpush.bf16.msrb.mxu2 %v1490_v37 }
  0xc0   :  { %893 = vmatpush.bf16.msra.mxu0 %v1473_v54 }
  0xc1   :  { %v259_v49 = vpack.c.bf16 %v255_v48, %v255_v48 }
  0xc3   :  { %697 = vmatmul.bf16.vlgmr.msra.gmra.mxu3 %v259_v49  ;;  %710 = vmatmul.bf16.vlgmr.msrb.gmra.mxu0 %v256_v41  ;;  %v1485_v41 = vld [vmem:[#allocation12] sm:$0xff] }
  0xc4   :  { %v250_v50 = vpop.f32.mrf.mxu3  ;;  %894 = vmatpush.bf16.msra.mxu0 %v1472_v55  ;;  %908 = vmatpush.bf16.msrb.mxu1 %v1479_v1 }
  0xc5   :  { %989 = vmatpush.bf16.msrb.mxu2 %v1489_v38 }
  0xc6   :  { %736 = vmatmul.bf16.vlgmr.msra.gmra.mxu2 %v258_v42 }
  0xc8   :  { %895 = vmatpush.bf16.msra.mxu0 %v1471_v57  ;;  %909 = vmatpush.bf16.msrb.mxu1 %v1478_v4 }
  0xc9   :  { %990 = vmatpush.bf16.msrb.mxu2 %v1488_v39 }
  0xcc   :  { %896 = vmatpush.bf16.msra.mxu0 %v1470_v59  ;;  %910 = vmatpush.bf16.msrb.mxu1 %v1477_v8 }
  0xcd   :  { %991 = vmatpush.bf16.msrb.mxu2 %v1487_v25 }
  0xd0   :  { %897 = vmatpush.bf16.msra.mxu0 %v1469_v61 }
  0xd1   :  { %992 = vmatpush.bf16.msrb.mxu2 %v1486_v40 }
  0xd3   :  { %749 = vmatmul.bf16.vlgmr.msrb.gmra.mxu3 %v259_v49 }
  0xd5   :  { %993 = vmatpush.bf16.msrb.mxu2 %v1485_v41 }
 0x12b   :  { %v672_v63 = vpop.f32.mrf.mxu1 }
 0x130   :  { %v659_v2 = vpop.f32.mrf.mxu0 }
 0x131   :  { %v660_v12 = vadd.f32 %v659_v2, %v326_v9 }
 0x133   :  { %v674_v3 = vpop.f32.mrf.mxu1  ;;  %v673_v16 = vadd.f32 %v672_v63, %v660_v12 }
 0x138   :  { %v661_v7 = vpop.f32.mrf.mxu0 }
 0x139   :  { %v685_v5 = vpop.f32.mrf.mxu2 }
 0x13a   :  { %v686_v18 = vadd.f32 %v685_v5, %v673_v16 }
 0x13b   :  { %v724_v10 = vpop.f32.mrf.mxu1 }
 0x140   :  { %v711_v14 = vpop.f32.mrf.mxu0 }
 0x141   :  { %v687_v13 = vpop.f32.mrf.mxu2  ;;  %v712_v28 = vadd.f32 %v711_v14, %v327_v24 }
 0x143   :  { %v726_v17 = vpop.f32.mrf.mxu1  ;;  %v725_v30 = vadd.f32 %v724_v10, %v712_v28 }
 0x146   :  { %v698_v19 = vpop.f32.mrf.mxu3 }
 0x147   :  { %v699_v20 = vadd.f32 %v698_v19, %v686_v18 }
 0x148   :  { %v713_v22 = vpop.f32.mrf.mxu0 }
 0x149   :  { %v737_v21 = vpop.f32.mrf.mxu2  ;;  %v754_v23 = vmax.f32 %v699_v20, 0.0 }
 0x14a   :  { %v738_v31 = vadd.f32 %v737_v21, %v725_v30 }
 0x14b   :  { %v756_v26 = vpack.c.bf16 %v754_v23, %v754_v23 }
 0x14d   :  { %898 = vmatmul.bf16.vlgmr.msra.gmra.mxu0 %v756_v26 }
 0x14e   :  { %v700_v27 = vpop.f32.mrf.mxu3 }
 0x151   :  { %v739_v29 = vpop.f32.mrf.mxu2 }
 0x156   :  { %v750_v32 = vpop.f32.mrf.mxu3 }
 0x157   :  { %v751_v33 = vadd.f32 %v750_v32, %v738_v31 }
 0x159   :  { %v755_v34 = vmax.f32 %v751_v33, 0.0 }
 0x15b   :  { %v757_v35 = vpack.c.bf16 %v755_v34, %v755_v34 }
 0x15d   :  { %911 = vmatmul.bf16.vlgmr.msrb.gmra.mxu1 %v757_v35 }
 0x15e   :  { %v752_v36 = vpop.f32.mrf.mxu3 }
 0x1ca   :  { %v899_v42 = vpop.f32.mrf.mxu0 }
 0x1cb   :  { %v900_v45 = vadd.f32 %v1506_v44, %v899_v42 }
 0x1d2   :  { %v901_v43 = vpop.f32.mrf.mxu0 }
 0x1da   :  { %v912_v46 = vpop.f32.mrf.mxu1 }
 0x1db   :  { %v913_v47 = vadd.f32 %v912_v46, %v900_v45 }
 0x1dd   :  { %v916_v48 = vmax.f32 %v913_v47, 0.0 }
 0x1df   :  { %v917_v49 = vpack.c.bf16 %v916_v48, %v916_v48 }
 0x1e1   :  { %994 = vmatmul.bf16.vlgmr.msrb.gmra.mxu2 %v917_v49 }
 0x1e2   :  { %v914_v50 = vpop.f32.mrf.mxu1 }
 0x264   :  { %v995_v52 = vpop.f32.mrf.mxu2 }
 0x265   :  { %v996_v53 = vadd.f32 %v1507_v51, %v995_v52 }
 0x267   :  { %v999_v54 = vpack.c.bf16 %v996_v53, %v996_v53 }
 0x269   :  { %1000 = vst [vmem:[%s1796_s9] sm:$0xf] %v999_v54 }
 0x26c   :  { %v997_v55 = vpop.f32.mrf.mxu2 }
 0x26d   :  { %1005 = vsyncpa [#allocation3], 1 }
 0x26e   :  { %1006 = vsyncpa [#allocation5], 1 }
 0x26f   :  { %1007 = vsyncpa [#allocation8], 1 }
 0x270   :  { %1008 = vsyncpa [#allocation11], 1 }

</bundles_post_ra>
